<compile_context>
chip_gen: v7x
topology: tpu7x:2x2x1
jax: 0.10.0
libtpu: 0.0.40
codegen_flags: <defaults>
</compile_context>

<pallas_src>
import jax
import jax.numpy as jnp
from jax.experimental import pallas as pl
from jax.experimental.pallas import tpu as pltpu

PADDING_IDX = 1  # esm1_alphabet.padding_idx (ESM-1 alphabet convention)


# --------------------------------------------------------------------------
# Kernel ('avg')
# --------------------------------------------------------------------------
def _avg_pool_kernel(last_k_ref, mask_ref, den_ref, hid_ref, out_ref, acc_ref):
    """Masked mean over the sequence axis, accumulated across the S grid axis.

    last_k_ref : (nb,)        int32 SMEM  -- last non-padding S-block per batch block
    mask_ref   : (TB, 1, TS)  hidden dtype (1 for real tokens, 0 for padding)
    den_ref    : (TB, 1)      float32     (per-row token count)
    hid_ref    : (TB, TS, TH) float
    out_ref    : (TB, TH)     float
    acc_ref    : (TB, 1, TH)  float32 VMEM scratch
    """
    i = pl.program_id(0)
    k = pl.program_id(2)

    @pl.when(k == 0)
    def _init():
        acc_ref[...] = jnp.zeros_like(acc_ref)

    @pl.when(k <= last_k_ref[i])
    def _accumulate():
        # Batched (1,TS) @ (TS,TH) matmul on the MXU, contracting S; the mask
        # is the tiny lane-dense LHS, accumulation is in float32.
        acc_ref[...] += jax.lax.dot_general(
            mask_ref[...], hid_ref[...],
            dimension_numbers=(((2,), (1,)), ((0,), (0,))),
            preferred_element_type=jnp.float32)

    @pl.when(k == pl.num_programs(2) - 1)
    def _finalize():
        # den == 0 (fully padded row) yields inf/nan, matching the reference.
        out_ref[...] = (acc_ref[:, 0, :] / den_ref[...]).astype(out_ref.dtype)


# --------------------------------------------------------------------------
# Wrapper
# --------------------------------------------------------------------------
def _pick_tile(dim, target, align):
    """Largest `align`-aligned divisor of `dim` <= target, else the full dim."""
    if dim <= target:
        return dim
    t = (target // align) * align
    while t >= align:
        if dim % t == 0:
            return t
        t -= align
    return dim


def _check_tile(name, tile, dim, align):
    if dim % tile != 0:
        raise ValueError(f"{name}={tile} must evenly divide {dim}")
    if tile != dim and tile % align != 0:
        raise ValueError(f"{name}={tile} must be a multiple of {align} or equal {dim}")


def _blk_bytes(shape, itemsize):
    """Rough VMEM footprint of one buffered block (pad last two dims)."""
    shape = list(shape)
    shape[-1] = -(-shape[-1] // 128) * 128
    shape[-2] = -(-shape[-2] // 8) * 8
    n = 1
    for d in shape:
        n *= d
    return n * itemsize


_VMEM_CAP = 48 * 1024 * 1024  # stays inside v7x's 64 MiB/TC with headroom


def pooler(tokens, outputs, pooler_type="avg", *, tb=None, ts=None, th=None):
    """JAX/Pallas equivalent of Pooler.forward(tokens, outputs)."""
    assert pooler_type in ("cls", "avg"), (
        "unrecognized pooling type %s" % pooler_type)
    B, S, H = outputs.shape
    out_dtype = outputs.dtype

    if pooler_type == "cls":
        # Pure strided slice of row 0: any Pallas tiling would DMA a
        # sublane-aligned slab and throw away >=7/8 of the HBM bytes, so the
        # XLA slice is the bandwidth-optimal implementation (perf review).
        return outputs[:, 0, :]

    # -------- 'avg' --------
    itemsize = jnp.dtype(out_dtype).itemsize
    sub_align = {4: 8, 2: 16, 1: 32}.get(itemsize, 8)

    TB = tb if tb is not None else _pick_tile(B, sub_align, sub_align)
    _check_tile("tb", TB, B, sub_align)
    nb = B // TB

    if th is None:
        th_target = 1024 if itemsize <= 2 else 512
        if nb == 1 and H >= 256:
            # v7x has 2 TensorCores: keep >= 2 parallel output tiles.
            th_target = min(th_target, max(128, H // 2))
        TH = _pick_tile(H, th_target, 128)
    else:
        TH = th
    _check_tile("th", TH, H, 128)
    nh = H // TH

    # TS is the lane dim of the mask and the sublane dim of the hidden states;
    # 128-alignment (or full S) satisfies both for every dtype.
    TS = ts if ts is not None else _pick_tile(S, 512, 128)
    _check_tile("ts", TS, S, 128)
    ns = S // TS

    valid = tokens != PADDING_IDX                                    # (B, S)
    mask = valid.astype(out_dtype)[:, None, :]                       # (B, 1, S)
    den = jnp.sum(valid, axis=-1, keepdims=True).astype(jnp.float32)  # (B, 1)

    # Per batch-block index of the last S-block containing a real token: lets
    # the index_map clamp (repeated block index => DMA elided) and pl.when
    # skip trailing all-padding sequence tiles entirely.
    pos = jnp.arange(S, dtype=jnp.int32)
    last_pos = jnp.max(jnp.where(valid, pos, -1), axis=-1)           # (B,)
    blk_last = jnp.max(last_pos.reshape(nb, TB), axis=-1)            # (nb,)
    last_k = jnp.clip(blk_last // TS, 0, ns - 1).astype(jnp.int32)   # (nb,)

    # VMEM budget: double-buffered inputs/outputs + accumulator + margin.
    est = 2 * (_blk_bytes((TB, TS, TH), itemsize)     # hidden states
               + _blk_bytes((TB, 1, TS), itemsize)    # mask
               + _blk_bytes((TB, 1), 4)               # den
               + _blk_bytes((TB, TH), itemsize))      # out
    est += _blk_bytes((TB, 1, TH), 4)                 # f32 accumulator
    vmem_limit = int(min(_VMEM_CAP, max(est + (4 << 20), 16 << 20)))

    grid = (nb, nh, ns)  # reduction axis (S) last

    return pl.pallas_call(
        _avg_pool_kernel,
        out_shape=jax.ShapeDtypeStruct((B, H), out_dtype),
        grid_spec=pltpu.PrefetchScalarGridSpec(
            num_scalar_prefetch=1,
            grid=grid,
            in_specs=[
                # mask: lane-dense along S (the contraction dim).
                pl.BlockSpec((TB, 1, TS),
                             lambda i, j, k, lk: (i, 0, jnp.minimum(k, lk[i]))),
                # den: constant over j/k (re-DMA elided).
                pl.BlockSpec((TB, 1), lambda i, j, k, lk: (i, 0)),
                # hidden states.
                pl.BlockSpec((TB, TS, TH),
                             lambda i, j, k, lk: (i, jnp.minimum(k, lk[i]), j)),
            ],
            out_specs=pl.BlockSpec((TB, TH), lambda i, j, k, lk: (i, j)),
            scratch_shapes=[pltpu.VMEM((TB, 1, TH), jnp.float32)],
        ),
        compiler_params=pltpu.CompilerParams(
            dimension_semantics=("parallel", "parallel", "arbitrary"),
            vmem_limit_bytes=vmem_limit,
        ),
    )(last_k, mask, den, outputs)


# --------------------------------------------------------------------------
# Reference + self-test
# --------------------------------------------------------------------------
def _reference(tokens, outputs, pooler_type):
    """Pure-JAX reference mirroring the PyTorch forward."""
    attention_mask = 1.0 - (tokens == PADDING_IDX).astype(outputs.dtype)
    if pooler_type == "cls":
        return outputs[:, 0]
    num = (outputs * attention_mask[:, :, None]).sum(axis=1)
    den = attention_mask.sum(axis=-1)[:, None]
    return num / den


if __name__ == "__main__":
    key = jax.random.PRNGKey(0)
    ks = jax.random.split(key, 6)
    ok = True

    def _check(tokens, outputs, ptype, atol, rtol, **tiles):
        got = jax.block_until_ready(
            pooler(tokens, outputs, pooler_type=ptype, **tiles))
        want = _reference(tokens, outputs, ptype)
        return (got.shape == want.shape
                and bool(jnp.allclose(got, want, atol=atol, rtol=rtol)))

    # --- small shapes (single grid step) ---
    B, S, H = 2, 8, 32
    tokens = jax.random.randint(ks[0], (B, S), 4, 25, dtype=jnp.int32)
    tokens = tokens.at[0, S - 3:].set(PADDING_IDX)   # seq 0: 3 padded positions
    tokens = tokens.at[1, S - 1:].set(PADDING_IDX)   # seq 1: 1 padded position
    outputs = jax.random.normal(ks[1], (B, S, H), dtype=jnp.float32)
    ok &= _check(tokens, outputs, "avg", 5e-3, 5e-3)
    ok &= _check(tokens, outputs, "cls", 1e-6, 1e-6)

    # --- explicit tiles; entire trailing S-block is padding (skip path) ---
    B2, S2, H2 = 4, 256, 256
    tokens2 = jax.random.randint(ks[2], (B2, S2), 4, 25, dtype=jnp.int32)
    tokens2 = tokens2.at[:, 120:].set(PADDING_IDX)
    outputs2 = jax.random.normal(ks[3], (B2, S2, H2), dtype=jnp.float32)
    ok &= _check(tokens2, outputs2, "avg", 5e-3, 5e-3, tb=4, ts=128, th=128)
    ok &= _check(tokens2, outputs2, "cls", 1e-6, 1e-6)

    # --- default tiles, multi-block grid, interior + trailing padding ---
    B3, S3, H3 = 8, 1024, 256
    tokens3 = jax.random.randint(ks[4], (B3, S3), 4, 25, dtype=jnp.int32)
    tokens3 = tokens3.at[:, 400:].set(PADDING_IDX)   # trailing block fully padded
    tokens3 = tokens3.at[0, 50:60].set(PADDING_IDX)  # interior padding, row 0
    outputs3 = jax.random.normal(ks[5], (B3, S3, H3), dtype=jnp.float32)
    ok &= _check(tokens3, outputs3, "avg", 5e-3, 5e-3)
    ok &= _check(tokens3, outputs3, "cls", 1e-6, 1e-6)

    if ok:
        print("KERNEL_OK")
</pallas_src>

<mosaic_0001>
module attributes {stable_mosaic.version = 11 : i64} {
  func.func @_avg_pool_kernel(%arg0: i32, %arg1: i32, %arg2: i32, %arg3: memref<1xi32, #tpu.memory_space<smem>>, %arg4: memref<2x1x8xf32, #tpu.memory_space<vmem>>, %arg5: memref<2x1xf32, #tpu.memory_space<vmem>>, %arg6: memref<2x8x32xf32, #tpu.memory_space<vmem>>, %arg7: memref<2x32xf32, #tpu.memory_space<vmem>>, %arg8: memref<2x1x32xf32, #tpu.memory_space<vmem>>) attributes {dimension_semantics = [#tpu.dimension_semantics<parallel>, #tpu.dimension_semantics<parallel>, #tpu.dimension_semantics<arbitrary>], iteration_bounds = array<i64: 1, 1, 1>, scalar_prefetch = 1 : i64, scratch_operands = 1 : i64, tpu.core_type = #tpu.core_type<tc>, window_params = [{transform_indices = @transform_0, window_bounds = array<i64: 2, 1, 8>}, {transform_indices = @transform_1, window_bounds = array<i64: 2, 1>}, {transform_indices = @transform_2, window_bounds = array<i64: 2, 8, 32>}, {transform_indices = @transform_3, window_bounds = array<i64: 2, 32>}]} {
    %c0_i32 = arith.constant 0 : i32
    %0 = arith.cmpi eq, %arg2, %c0_i32 : i32
    %1 = arith.extui %0 : i1 to i32
    %c0_i32_0 = arith.constant 0 : i32
    %2 = arith.cmpi ne, %1, %c0_i32_0 : i32
    scf.if %2 {
      %cst = arith.constant 0.000000e+00 : f32
      %11 = vector.broadcast %cst : f32 to vector<2x1x32xf32>
      %c0 = arith.constant 0 : index
      %c0_4 = arith.constant 0 : index
      %c0_5 = arith.constant 0 : index
      %12 = vector.load %arg8[%c0, %c0_4, %c0_5] : memref<2x1x32xf32, #tpu.memory_space<vmem>>, vector<2x1x32xf32>
      tpu.vector_store %arg8[%c0, %c0_4, %c0_5], %11 {strides = array<i32>} : memref<2x1x32xf32, #tpu.memory_space<vmem>>, vector<2x1x32xf32>,
    } else {
    }
    %3 = arith.index_cast %arg0 : i32 to index
    %4 = memref.load %arg3[%3] : memref<1xi32, #tpu.memory_space<smem>>
    %5 = arith.cmpi sle, %arg2, %4 : i32
    %6 = arith.extui %5 : i1 to i32
    %c0_i32_1 = arith.constant 0 : i32
    %7 = arith.cmpi ne, %6, %c0_i32_1 : i32
    scf.if %7 {
      %c0 = arith.constant 0 : index
      %c0_4 = arith.constant 0 : index
      %c0_5 = arith.constant 0 : index
      %11 = vector.load %arg8[%c0, %c0_4, %c0_5] : memref<2x1x32xf32, #tpu.memory_space<vmem>>, vector<2x1x32xf32>
      %c0_6 = arith.constant 0 : index
      %c0_7 = arith.constant 0 : index
      %c0_8 = arith.constant 0 : index
      %12 = vector.load %arg4[%c0_6, %c0_7, %c0_8] : memref<2x1x8xf32, #tpu.memory_space<vmem>>, vector<2x1x8xf32>
      %c0_9 = arith.constant 0 : index
      %c0_10 = arith.constant 0 : index
      %c0_11 = arith.constant 0 : index
      %13 = vector.load %arg6[%c0_9, %c0_10, %c0_11] : memref<2x8x32xf32, #tpu.memory_space<vmem>>, vector<2x8x32xf32>
      %cst = arith.constant dense<0.000000e+00> : vector<2x1x32xf32>
      %14 = tpu.matmul %12, %13, %cst {dimension_numbers = #tpu.dot_dimension_numbers<[2], [1], [1], [2], [0, 0, 0, 1, 1, 2], [0], [0]>} : vector<2x1x8xf32>, vector<2x8x32xf32>, vector<2x1x32xf32> -> vector<2x1x32xf32>
      %15 = arith.addf %11, %14 : vector<2x1x32xf32>
      %c0_12 = arith.constant 0 : index
      %c0_13 = arith.constant 0 : index
      %c0_14 = arith.constant 0 : index
      %16 = vector.load %arg8[%c0_12, %c0_13, %c0_14] : memref<2x1x32xf32, #tpu.memory_space<vmem>>, vector<2x1x32xf32>
      tpu.vector_store %arg8[%c0_12, %c0_13, %c0_14], %15 {strides = array<i32>} : memref<2x1x32xf32, #tpu.memory_space<vmem>>, vector<2x1x32xf32>,
    } else {
    }
    %c0_i32_2 = arith.constant 0 : i32
    %8 = arith.cmpi eq, %arg2, %c0_i32_2 : i32
    %9 = arith.extui %8 : i1 to i32
    %c0_i32_3 = arith.constant 0 : i32
    %10 = arith.cmpi ne, %9, %c0_i32_3 : i32
    scf.if %10 {
      %c0 = arith.constant 0 : index
      %c0_4 = arith.constant 0 : index
      %c0_5 = arith.constant 0 : index
      %11 = vector.load %arg8[%c0, %c0_4, %c0_5] : memref<2x1x32xf32, #tpu.memory_space<vmem>>, vector<2x1x32xf32>
      %12 = vector.shape_cast %11 : vector<2x1x32xf32> to vector<2x32xf32>
      %c0_6 = arith.constant 0 : index
      %c0_7 = arith.constant 0 : index
      %13 = vector.load %arg5[%c0_6, %c0_7] : memref<2x1xf32, #tpu.memory_space<vmem>>, vector<2x1xf32>
      %14 = vector.broadcast %13 : vector<2x1xf32> to vector<2x32xf32>
      %15 = arith.divf %12, %14 : vector<2x32xf32>
      %c0_8 = arith.constant 0 : index
      %c0_9 = arith.constant 0 : index
      %16 = vector.load %arg7[%c0_8, %c0_9] : memref<2x32xf32, #tpu.memory_space<vmem>>, vector<2x32xf32>
      tpu.vector_store %arg7[%c0_8, %c0_9], %15 {strides = array<i32>} : memref<2x32xf32, #tpu.memory_space<vmem>>, vector<2x32xf32>,
    } else {
    }
    return
  }
  func.func @transform_0(%arg0: i32, %arg1: i32, %arg2: i32, %arg3: memref<1xi32, #tpu.memory_space<smem>>) -> (i32, i32, i32) {
    %0 = arith.index_cast %arg0 : i32 to index
    %1 = memref.load %arg3[%0] : memref<1xi32, #tpu.memory_space<smem>>
    %2 = arith.minsi %arg2, %1 : i32
    %c0_i32 = arith.constant 0 : i32
    %c0_i32_0 = arith.constant 0 : i32
    return %arg0, %c0_i32, %2 : i32, i32, i32
  }
  func.func @transform_1(%arg0: i32, %arg1: i32, %arg2: i32, %arg3: memref<1xi32, #tpu.memory_space<smem>>) -> (i32, i32) {
    %c0_i32 = arith.constant 0 : i32
    %c0_i32_0 = arith.constant 0 : i32
    return %arg0, %c0_i32 : i32, i32
  }
  func.func @transform_2(%arg0: i32, %arg1: i32, %arg2: i32, %arg3: memref<1xi32, #tpu.memory_space<smem>>) -> (i32, i32, i32) {
    %0 = arith.index_cast %arg0 : i32 to index
    %1 = memref.load %arg3[%0] : memref<1xi32, #tpu.memory_space<smem>>
    %2 = arith.minsi %arg2, %1 : i32
    %c0_i32 = arith.constant 0 : i32
    return %arg0, %2, %arg1 : i32, i32, i32
  }
  func.func @transform_3(%arg0: i32, %arg1: i32, %arg2: i32, %arg3: memref<1xi32, #tpu.memory_space<smem>>) -> (i32, i32) {
    %c0_i32 = arith.constant 0 : i32
    return %arg0, %arg1 : i32, i32
  }
}

</mosaic_0001>

<bundles_post_ra>
// kernel: tpu_custom_call.1
= control target key start
LH: loop header
LB: loop body
LE: loop exit
PB: predicated region body
PF: predicated region fallthrough
CT: control target
= control target key end

     0   :  { %10 = vsyncpa [#allocation6], 0  ;;  %s463_s0 = inlined_call_operand.<no memory space> [shape: s32[1], index: 0, kind: input, shape index: {}]   ;;  %s464_s1 = inlined_call_operand.vmem [shape: f32[2,1,8], index: 1, kind: input, shape index: {}]   ;;  %s465_s2 = inlined_call_operand.vmem [shape: f32[2,1], index: 2, kind: input, shape index: {}]   ;;  %s466_s3 = inlined_call_operand.hbm [shape: f32[2,8,32], index: 3, kind: input, shape index: {}]   ;;  %s467_s4 = inlined_call_operand.hbm [shape: f32[2,32], index: 4, kind: output, shape index: {}]  }
   0x1   :  { %11 = vsyncpa [#allocation7], 0  ;;  %p297_p0 = scmp.gt.s32.totalorder %s463_s0, 0  ;;  %s385_s17 = smov [#allocation5]  }
   0x2   :  { %s35_s18 = sshll.u32 %s385_s17, 4  ;;  %s337_s29 = scalar_lea.hbm %s466_s3, 256  ;;  %s36_s18 = int_to_ptr.vmem [resolvable:$true] %s35_s18 }
   0x3   :  { %s425_s21 = scalar_select %p297_p0, 0, %s463_s0 }
   0x5   :  { %s298_s22 = sshll.u32 %s425_s21, 7 }
   0x6   :  { %s34_s25 = scalar_lea.hbm %s466_s3, %s298_s22 }
   0x7   :  { %s335_s26 = scalar_lea.hbm %s34_s25, 256  ;;  %p338_p2 = scmp.lt.u32.totalorder %s34_s25, %s466_s3 }
   0x8   :  { %p336_p1 = scmp.ne.s32.totalorder %s34_s25, %s335_s26  ;;  %p339_p3 = scmp.lt.u32.totalorder %s337_s29, %s335_s26 }
   0x9   :  { %p341_p5 = scmp.lt.u32.totalorder %s335_s26, %s34_s25 }
   0xa   :  { %p340_p4 = por %p339_p3, %p338_p2 }
   0xc   :  { %p342_p6 = por %p341_p5, %p340_p4 }
   0xe   :  { %p343_p7 = pnand %p342_p6, %p336_p1 }
  0x10   :  { %346 = shalt.err (!%p343_p7)
}
  0x11   :  { %s347_s6 = scalar_lea.vmem %s36_s18, 256  ;;  %p352_p9 = scmp.lt.s32.totalorder %s36_s18, %s36_s18 }
  0x12   :  { %p348_p8 = scmp.ne.s32.totalorder %s36_s18, %s347_s6  ;;  %p353_p10 = scmp.lt.s32.totalorder %s347_s6, %s347_s6 }
  0x14   :  { %p354_p11 = por %p353_p10, %p352_p9 }
  0x16   :  { %p355_p12 = pnand %p354_p11, %p348_p8 }
  0x18   :  { %358 = shalt.err (!%p355_p12)
}
  0x19   :  { %s386_s7 = smov 128   ;;  %s387_s8 = smov 8  }
  0x1a   :  { %41 = dma.hbm_to_vmem [thread:$0]  %s34_s25, 256, %s36_s18, [#allocation6], %s386_s7, %s386_s7, %s387_s8  }
  0x1b   :  { %381 = dma.done.wait [#allocation6], 256  }
  0x1c   :  { %382 = vsyncadd [#allocation6], 4294967040  ;;  %p301_p13 = scmp.lt.s32.totalorder %s463_s0, 0  ;;  %vm67_vm0 = vcmask 253952   ;;  %v388_v0 = vmov 0.0  }
  0x1d   :  { %68 = vst.msk [vmem:[#allocation2] sm:$0x1] %vm67_vm0, %v388_v0  ;;  %69 = vst.msk [vmem:[#allocation2 + $0x1] sm:$0x1] %vm67_vm0, %v388_v0  ;;  %v79_v1 = vld [vmem:[#allocation5] sm:$0xff] (!%p301_p13)  ;;  %v80_v2 = vld [vmem:[#allocation5 + $0x8] sm:$0xff] (!%p301_p13) }
  0x1e   :  { %s469_s21 = smov (!%p301_p13, %s425_s21), 0  ;;  %74 = sbr.rel (%p301_p13) target bundleno = 249 (0xf9), region = 25  ;;  %v389_v3 = vmov (!%p301_p13), 0.0   ;;  %vm81_vm1 = vcmask (!%p301_p13), 64512   ;;  %vm390_vm2 = vmmov (!%p301_p13), 0  }
  0x1f   :  { %s56_s12 = scalar_lea.vmem %s464_s1, %s469_s21  ;;  %311 = vmatprep.subr.mxu0 (!%p301_p13), %v389_v3  ;;  %316 = vmatprep.subr.mxu1 (!%p301_p13), %v389_v3 }
  0x20   :  { %v77_v4 = vld [vmem:[%s56_s12] sm:$0x1] (!%p301_p13)  ;;  %v78_v5 = vld [vmem:[%s56_s12 + $0x1] sm:$0x1] (!%p301_p13)  ;;  %312 = vmatpush3.msra.mxu0 (!%p301_p13), %v79_v1  ;;  %313 = vmatprep.mubr.msk.f32.mxu0 (!%p301_p13), %vm390_vm2, %v389_v3 }
  0x21   :  { %317 = vmatpush3.msra.mxu1 (!%p301_p13), %v80_v2  ;;  %318 = vmatprep.mubr.msk.f32.mxu1 (!%p301_p13), %vm390_vm2, %v389_v3 }
  0x22   :  { %314 = vmatmul.mubr.msk.f32.vlgmr.msra.gmra.mrb[0].mxu0 (!%p301_p13), %vm81_vm1, %v77_v4  ;;  %319 = vmatmul.mubr.msk.f32.vlgmr.msra.gmra.mrb[0].mxu1 (!%p301_p13), %vm81_vm1, %v78_v5 }
  0x24   :  { %v75_v6 = vld [vmem:[#allocation2] sm:$0x1] (!%p301_p13)  ;;  %v76_v7 = vld [vmem:[#allocation2 + $0x1] sm:$0x1] (!%p301_p13) }
  0xf5   :  { %v151_v8 = vpop.f32.mrb[0].mxu0  ;;  %v224_v9 = vpop.f32.mrb[0].mxu1 }
  0xf6   :  { %v228_v10 = vadd.f32 %v151_v8, %v75_v6  ;;  %v229_v11 = vadd.f32 %v224_v9, %v76_v7  ;;  %v315_v12 = vpop.f32.mrb[1].mxu0  ;;  %v320_v13 = vpop.f32.mrb[1].mxu1 }
  0xf8   :  { %231 = vst.msk [vmem:[#allocation2] sm:$0x1] %vm67_vm0, %v228_v10  ;;  %232 = vst.msk [vmem:[#allocation2 + $0x1] sm:$0x1] %vm67_vm0, %v229_v11 }
  0xf9 PF:  { %v238_v14 = vld [vmem:[%s465_s2] sm:$0x3]  ;;  %v391_v15 = vmov 0   ;;  %v243_v16 = vlaneseq  ;;  %v392_v23 = vmov 1966171168   ;;  %s393_s2 = smov [#allocation8]  }
  0xfa   :  { %330 = vset.pattern.permute.xlu0 %v391_v15  ;;  %v261_v24 = vunpack.c.l.s4 %v392_v23  ;;  %s283_s13 = sshll.u32 %s393_s2, 4  ;;  %vm275_vm3 = vcmask 254976   ;;  %s284_s13 = int_to_ptr.vmem [resolvable:$true] %s283_s13 }
  0xfb   :  { %241 = vperm.xlu0 %330, %v238_v14   ;;  %v244_v17 = vshrl.u32 %v243_v16, 7  ;;  %s359_s14 = scalar_lea.vmem %s284_s13, 32  ;;  %p364_p1 = scmp.lt.s32.totalorder %s284_s13, %s284_s13 }
  0xfc   :  { %v262_v26 = vunpack.c.0.s8 %v261_v24  ;;  %p360_p0 = scmp.ne.s32.totalorder %s284_s13, %s359_s14  ;;  %p365_p2 = scmp.lt.s32.totalorder %s359_s14, %s359_s14 }
  0xfd   :  { %v245_v18 = vsub.s32 0, %v244_v17  ;;  %v249_v19 = vsub.s32 1, %v244_v17 }
  0xfe   :  { %v265_v32 = vsub.s32 %v262_v26, %v244_v17  ;;  %p366_p3 = por %p365_p2, %p364_p1 }
  0xff   :  { %v236_v25 = vld [vmem:[#allocation2] sm:$0x1]  ;;  %v237_v27 = vld [vmem:[#allocation2 + $0x1] sm:$0x1] }
 0x100   :  { %p367_p4 = pnand %p366_p3, %p360_p0 }
 0x17a   :  { %v242_v20 = vpop.permute.xlu0 %241 }
 0x17b   :  { %v246_v21 = vrot.slane %v242_v20, %v245_v18  ;;  %v250_v22 = vrot.slane %v242_v20, %v249_v19 }
 0x17d   :  { %331 = vrcp.f32 %v246_v21 }
 0x17e   :  { %333 = vrcp.f32 %v250_v22 }
 0x187   :  { %v332_v28 = vpop.eup %331 }
 0x188   :  { %v334_v29 = vpop.eup %333  ;;  %v254_v30 = vmul.f32 %v332_v28, %v236_v25 }
 0x189   :  { %v256_v31 = vmul.f32 %v334_v29, %v237_v27 }
 0x18b   :  { %v259_v33 = vcombine.low %v254_v30, %v256_v31 }
 0x18d   :  { %v266_v34 = vrot.slane %v259_v33, %v265_v32 }
 0x18f   :  { %v273_v35 = vrot.slane %v266_v34, %v265_v32 }
 0x191   :  { %276 = vst.msk [vmem:[#allocation8] sm:$0x3] %vm275_vm3, %v273_v35 }
 0x192   :  { %370 = shalt.err (!%p367_p4)
}
 0x193   :  { %s371_s17 = scalar_lea.hbm %s467_s4, 32 }
 0x194   :  { %p372_p5 = scmp.ne.s32.totalorder %s467_s4, %s371_s17  ;;  %p375_p6 = scmp.lt.u32.totalorder %s371_s17, %s467_s4 }
 0x196   :  { %p377_p7 = pnand %p375_p6, %p372_p5 }
 0x198   :  { %380 = shalt.err (!%p377_p7)
}
 0x199   :  { %286 = dma.vmem_to_hbm [thread:$0]  %s284_s13, 32, %s467_s4, [#allocation7]  }
 0x19a   :  { %383 = dma.done.wait [#allocation7], 32  }
 0x19b   :  { %384 = vsyncadd [#allocation7], 4294967264 }
 0x19c   :  { %290 = vsyncpa [#allocation6], 1 }
 0x19d   :  { %291 = vsyncpa [#allocation7], 1 }

</bundles_post_ra>
